<compile_context>
chip_gen: v7x
topology: tpu7x:2x2x1
jax: 0.10.0
libtpu: 0.0.40
codegen_flags: <defaults>
</compile_context>

<pallas_src>
import functools

import numpy as np
import jax
import jax.numpy as jnp
from jax.experimental import pallas as pl
from jax.experimental.pallas import tpu as pltpu


# ---------------- parameter setup (deterministic, plain numpy) --------------

def get_laplacian_kernel2d(kernel_size: int) -> np.ndarray:
    k = np.ones((kernel_size, kernel_size), dtype=np.float32)
    mid = kernel_size // 2
    k[mid, mid] = 1.0 - kernel_size ** 2
    return k


def normalize_kernel2d(kernel: np.ndarray) -> np.ndarray:
    return kernel / np.abs(kernel).sum()


# ---------------------------- Pallas kernel ---------------------------------

def _laplacian_kernel(x_ref, o_ref, *, ks, pad_lo, pad_hi, border,
                      w_box, w_center_adj):
    # x_ref / o_ref : (T, H, W) blocks in VMEM.
    T, H, W = x_ref.shape
    x = x_ref[...].astype(jnp.float32)

    # ---- vertical (row) box sum; border halo built as in-register bands ----
    if pad_lo or pad_hi:
        if border == "reflect":
            top = [x[:, pad_lo - i:pad_lo - i + 1, :] for i in range(pad_lo)]
            bot = [x[:, H - 2 - i:H - 1 - i, :] for i in range(pad_hi)]
        elif border == "replicate":
            top = [x[:, 0:1, :]] * pad_lo
            bot = [x[:, H - 1:H, :]] * pad_hi
        elif border == "circular":
            top = [x[:, H - pad_lo:, :]] if pad_lo else []
            bot = [x[:, :pad_hi, :]] if pad_hi else []
        else:  # constant (zero) padding
            top = [jnp.zeros((T, pad_lo, W), jnp.float32)] if pad_lo else []
            bot = [jnp.zeros((T, pad_hi, W), jnp.float32)] if pad_hi else []
        xp = jnp.concatenate(top + [x] + bot, axis=1)      # (T, H+ks-1, W)
    else:
        xp = x

    rowsum = xp[:, 0:H, :]
    for ki in range(1, ks):
        rowsum = rowsum + xp[:, ki:ki + H, :]

    # ---- horizontal (column) box sum on the in-register row sums ----
    # (border padding along W commutes with the row summation for all modes)
    if pad_lo or pad_hi:
        if border == "reflect":
            left = [rowsum[:, :, pad_lo - j:pad_lo - j + 1] for j in range(pad_lo)]
            right = [rowsum[:, :, W - 2 - j:W - 1 - j] for j in range(pad_hi)]
        elif border == "replicate":
            left = [rowsum[:, :, 0:1]] * pad_lo
            right = [rowsum[:, :, W - 1:W]] * pad_hi
        elif border == "circular":
            left = [rowsum[:, :, W - pad_lo:]] if pad_lo else []
            right = [rowsum[:, :, :pad_hi]] if pad_hi else []
        else:  # constant
            left = [jnp.zeros((T, H, pad_lo), jnp.float32)] if pad_lo else []
            right = [jnp.zeros((T, H, pad_hi), jnp.float32)] if pad_hi else []
        rp = jnp.concatenate(left + [rowsum] + right, axis=2)   # (T, H, W+ks-1)
    else:
        rp = rowsum

    box = rp[:, :, 0:W]
    for kj in range(1, ks):
        box = box + rp[:, :, kj:kj + W]

    # ---- Laplacian = w_off * box + (w_center - w_off) * center_tap ----
    # Re-read the centre tap from VMEM instead of keeping the f32 copy of x
    # live across the whole body (frees one full live plane per block).
    center = x_ref[...].astype(jnp.float32)
    o_ref[...] = (box * w_box + center * w_center_adj).astype(o_ref.dtype)


# ------------------------------- wrapper -------------------------------------

_SUPPORTED_BORDERS = ("reflect", "replicate", "circular", "constant")


def laplacian(image: jax.Array,
              kernel_size: int,
              border_type: str = "reflect",
              normalized: bool = True,
              *,
              _tile_bc: int | None = None) -> jax.Array:
    """image: [B, C, H, W] -> [B, C, H, W] (same dtype)."""
    B, C, H, W = image.shape
    if kernel_size < 1 or kernel_size % 2 != 1:
        raise ValueError("kernel_size must be a positive odd integer")
    if border_type not in _SUPPORTED_BORDERS:
        raise ValueError(f"unsupported border_type: {border_type}")

    # kornia _compute_padding: front = (ks-1)//2, rear = (ks-1) - front
    pad_lo = (kernel_size - 1) // 2
    pad_hi = (kernel_size - 1) - pad_lo
    pad_max = max(pad_lo, pad_hi)
    if border_type == "reflect" and (pad_max >= H or pad_max >= W):
        raise ValueError("reflect padding requires padding < spatial size "
                         f"(kernel_size={kernel_size}, H={H}, W={W})")
    if border_type == "circular" and (pad_max > H or pad_max > W):
        raise ValueError("circular padding requires padding <= spatial size")

    weights = get_laplacian_kernel2d(kernel_size)
    if normalized:
        weights = normalize_kernel2d(weights)
    mid = kernel_size // 2
    w_center = float(weights[mid, mid])
    w_off = float(weights[0, 0]) if kernel_size > 1 else 0.0

    BC = B * C
    x = image.reshape(BC, H, W)

    # ---- tile selection: small working set + enough grid steps ----
    in_sz = np.dtype(image.dtype).itemsize
    h_pad = ((H + 7) // 8) * 8
    w_pad = ((W + 127) // 128) * 128
    # double-buffered in+out blocks + ~6 live f32 full-plane temporaries
    plane_bytes = h_pad * w_pad * (4 * in_sz + 6 * 4)
    if _tile_bc is not None:
        tile_bc = int(max(1, min(BC, _tile_bc)))
    else:
        budget = 5 << 20                       # ~5 MiB working set per step
        cap_budget = max(1, budget // plane_bytes)
        cap_split = max(1, BC // 8)            # keep >= min(BC, 8) grid steps
        tile_bc = int(max(1, min(BC, cap_budget, cap_split)))
    grid = (pl.cdiv(BC, tile_bc),)

    try:
        vmem_cap = int(pltpu.get_tpu_info().vmem_capacity_bytes)
    except Exception:
        vmem_cap = 64 << 20                    # v7x per-TC size: safe lower bound
    vmem_limit = int(min(vmem_cap * 3 // 4,
                         max(24 << 20, 2 * tile_bc * plane_bytes)))

    kernel_fn = functools.partial(
        _laplacian_kernel, ks=kernel_size,
        pad_lo=pad_lo, pad_hi=pad_hi, border=border_type,
        w_box=w_off, w_center_adj=w_center - w_off)

    out = pl.pallas_call(
        kernel_fn,
        out_shape=jax.ShapeDtypeStruct((BC, H, W), image.dtype),
        grid=grid,
        in_specs=[pl.BlockSpec((tile_bc, H, W), lambda i: (i, 0, 0))],
        out_specs=pl.BlockSpec((tile_bc, H, W), lambda i: (i, 0, 0)),
        compiler_params=pltpu.CompilerParams(
            dimension_semantics=("parallel",),
            vmem_limit_bytes=vmem_limit),
    )(x)
    return out.reshape(B, C, H, W)


class Laplacian:
    """Pallas port of torchkit Laplacian module (forward only)."""

    def __init__(self, kernel_size: int, border_type: str = "reflect",
                 normalized: bool = True):
        self.kernel_size = kernel_size
        self.border_type = border_type
        self.normalized = normalized

    def __call__(self, image: jax.Array) -> jax.Array:
        return laplacian(image, self.kernel_size, self.border_type,
                         self.normalized)


# ------------------------- pure-JAX reference --------------------------------

_PAD_MODE = {
    "reflect": "reflect",
    "replicate": "edge",
    "circular": "wrap",
    "constant": "constant",
}


def _laplacian_ref(image, kernel_size, border_type="reflect", normalized=True):
    B, C, H, W = image.shape
    weights = get_laplacian_kernel2d(kernel_size)
    if normalized:
        weights = normalize_kernel2d(weights)
    pad_lo = (kernel_size - 1) // 2
    pad_hi = (kernel_size - 1) - pad_lo
    xp = jnp.pad(image, ((0, 0), (0, 0), (pad_lo, pad_hi), (pad_lo, pad_hi)),
                 mode=_PAD_MODE[border_type])
    out = jnp.zeros((B, C, H, W), jnp.float32)
    for ki in range(kernel_size):
        for kj in range(kernel_size):
            out = out + float(weights[ki, kj]) * \
                xp[:, :, ki:ki + H, kj:kj + W].astype(jnp.float32)
    return out.astype(image.dtype)


# --------------------------------- main ---------------------------------------

if __name__ == "__main__":
    key = jax.random.PRNGKey(0)
    x = jax.random.uniform(key, (2, 4, 16, 16), dtype=jnp.float32)

    # Primary config (module defaults).
    laplace = Laplacian(kernel_size=3, border_type="reflect", normalized=True)
    y = jax.block_until_ready(laplace(x))
    assert y.shape == x.shape and y.dtype == x.dtype
    np.testing.assert_allclose(np.asarray(y),
                               np.asarray(_laplacian_ref(x, 3, "reflect", True)),
                               rtol=1e-5, atol=1e-5)

    # Other border modes / kernel sizes.
    for ks, bt, nm in [(5, "reflect", True), (3, "replicate", False),
                       (3, "circular", True), (3, "constant", True)]:
        yk = jax.block_until_ready(laplacian(x, ks, bt, nm))
        np.testing.assert_allclose(np.asarray(yk),
                                   np.asarray(_laplacian_ref(x, ks, bt, nm)),
                                   rtol=1e-5, atol=1e-5)

    # Unaligned spatial dims (H % 8 != 0, W % 128 != 0) and a partial last grid
    # block (BC=3 with tile_bc=2 -> masked writeback on the final block).
    x2 = jax.random.uniform(jax.random.PRNGKey(1), (1, 3, 17, 21),
                            dtype=jnp.float32)
    y2_ref = _laplacian_ref(x2, 3, "reflect", True)
    for kwargs in ({}, {"_tile_bc": 2}):
        y2 = jax.block_until_ready(laplacian(x2, 3, "reflect", True, **kwargs))
        np.testing.assert_allclose(np.asarray(y2), np.asarray(y2_ref),
                                   rtol=1e-5, atol=1e-5)

    print("KERNEL_OK")
</pallas_src>

<mosaic_0001>
module attributes {stable_mosaic.version = 11 : i64} {
  func.func @_laplacian_kernel(%arg0: i32, %arg1: memref<1x16x16xf32, #tpu.memory_space<vmem>>, %arg2: memref<1x16x16xf32, #tpu.memory_space<vmem>>) attributes {dimension_semantics = [#tpu.dimension_semantics<parallel>], iteration_bounds = array<i64: 8>, scalar_prefetch = 0 : i64, scratch_operands = 0 : i64, tpu.core_type = #tpu.core_type<tc>, window_params = [{transform_indices = @transform_0, window_bounds = array<i64: 1, 16, 16>}, {transform_indices = @transform_1, window_bounds = array<i64: 1, 16, 16>}]} {
    %c0 = arith.constant 0 : index
    %c0_0 = arith.constant 0 : index
    %c0_1 = arith.constant 0 : index
    %0 = vector.load %arg1[%c0, %c0_0, %c0_1] : memref<1x16x16xf32, #tpu.memory_space<vmem>>, vector<1x16x16xf32>
    %1 = vector.extract_strided_slice %0 {offsets = [0, 1, 0], sizes = [1, 1, 16], strides = [1, 1, 1]} : vector<1x16x16xf32> to vector<1x1x16xf32>
    %2 = vector.extract_strided_slice %0 {offsets = [0, 14, 0], sizes = [1, 1, 16], strides = [1, 1, 1]} : vector<1x16x16xf32> to vector<1x1x16xf32>
    %3 = tpu.concatenate %1, %0, %2 in 1 : vector<1x1x16xf32>, vector<1x16x16xf32>, vector<1x1x16xf32> -> vector<1x18x16xf32>
    %4 = vector.extract_strided_slice %3 {offsets = [0, 0, 0], sizes = [1, 16, 16], strides = [1, 1, 1]} : vector<1x18x16xf32> to vector<1x16x16xf32>
    %5 = vector.extract_strided_slice %3 {offsets = [0, 1, 0], sizes = [1, 16, 16], strides = [1, 1, 1]} : vector<1x18x16xf32> to vector<1x16x16xf32>
    %6 = arith.addf %4, %5 : vector<1x16x16xf32>
    %7 = vector.extract_strided_slice %3 {offsets = [0, 2, 0], sizes = [1, 16, 16], strides = [1, 1, 1]} : vector<1x18x16xf32> to vector<1x16x16xf32>
    %8 = arith.addf %6, %7 : vector<1x16x16xf32>
    %9 = vector.extract_strided_slice %8 {offsets = [0, 0, 1], sizes = [1, 16, 1], strides = [1, 1, 1]} : vector<1x16x16xf32> to vector<1x16x1xf32>
    %10 = vector.extract_strided_slice %8 {offsets = [0, 0, 14], sizes = [1, 16, 1], strides = [1, 1, 1]} : vector<1x16x16xf32> to vector<1x16x1xf32>
    %11 = tpu.concatenate %9, %8, %10 in 2 : vector<1x16x1xf32>, vector<1x16x16xf32>, vector<1x16x1xf32> -> vector<1x16x18xf32>
    %12 = vector.extract_strided_slice %11 {offsets = [0, 0, 0], sizes = [1, 16, 16], strides = [1, 1, 1]} : vector<1x16x18xf32> to vector<1x16x16xf32>
    %13 = vector.extract_strided_slice %11 {offsets = [0, 0, 1], sizes = [1, 16, 16], strides = [1, 1, 1]} : vector<1x16x18xf32> to vector<1x16x16xf32>
    %14 = arith.addf %12, %13 : vector<1x16x16xf32>
    %15 = vector.extract_strided_slice %11 {offsets = [0, 0, 2], sizes = [1, 16, 16], strides = [1, 1, 1]} : vector<1x16x18xf32> to vector<1x16x16xf32>
    %16 = arith.addf %14, %15 : vector<1x16x16xf32>
    %c0_2 = arith.constant 0 : index
    %c0_3 = arith.constant 0 : index
    %c0_4 = arith.constant 0 : index
    %17 = vector.load %arg1[%c0_2, %c0_3, %c0_4] : memref<1x16x16xf32, #tpu.memory_space<vmem>>, vector<1x16x16xf32>
    %cst = arith.constant 6.250000e-02 : f32
    %18 = vector.broadcast %cst : f32 to vector<1x16x16xf32>
    %19 = arith.mulf %16, %18 : vector<1x16x16xf32>
    %cst_5 = arith.constant -5.625000e-01 : f32
    %20 = vector.broadcast %cst_5 : f32 to vector<1x16x16xf32>
    %21 = arith.mulf %17, %20 : vector<1x16x16xf32>
    %22 = arith.addf %19, %21 : vector<1x16x16xf32>
    %c0_6 = arith.constant 0 : index
    %c0_7 = arith.constant 0 : index
    %c0_8 = arith.constant 0 : index
    %23 = vector.load %arg2[%c0_6, %c0_7, %c0_8] : memref<1x16x16xf32, #tpu.memory_space<vmem>>, vector<1x16x16xf32>
    tpu.vector_store %arg2[%c0_6, %c0_7, %c0_8], %22 {strides = array<i32>} : memref<1x16x16xf32, #tpu.memory_space<vmem>>, vector<1x16x16xf32>,
    return
  }
  func.func @transform_0(%arg0: i32) -> (i32, i32, i32) {
    %c0_i32 = arith.constant 0 : i32
    %c0_i32_0 = arith.constant 0 : i32
    %c0_i32_1 = arith.constant 0 : i32
    return %arg0, %c0_i32, %c0_i32_0 : i32, i32, i32
  }
  func.func @transform_1(%arg0: i32) -> (i32, i32, i32) {
    %c0_i32 = arith.constant 0 : i32
    %c0_i32_0 = arith.constant 0 : i32
    %c0_i32_1 = arith.constant 0 : i32
    return %arg0, %c0_i32, %c0_i32_0 : i32, i32, i32
  }
}

</mosaic_0001>

<bundles_post_ra>
// kernel: tpu_custom_call.1
= control target key start
LH: loop header
LB: loop body
LE: loop exit
PB: predicated region body
PF: predicated region fallthrough
CT: control target
= control target key end

     0   :  { %6 = vsyncpa [#allocation3], 0  ;;  %s666_s0 = inlined_call_operand.hbm [shape: f32[8,16,16], index: 0, kind: input, shape index: {}]   ;;  %s667_s1 = inlined_call_operand.hbm [shape: f32[8,16,16], index: 1, kind: output, shape index: {}]  }
   0x1   :  { %8 = vsyncpa [#allocation3 + $0x1], 0 }
   0x2   :  { %9 = vsyncpa [#allocation4], 0 }
   0x3   :  { %11 = vsyncpa [#allocation4 + $0x1], 0  ;;  %s502_s6 = smov 0   ;;  %s504_s7 = smov 0  }
   0x4   :  { %s506_s8 = smov 0   ;;  %s508_s9 = smov 0  }
   0x5 LB: > { %s523_s10 = sadd.s32 4294967295, %s480_s9   ;;  %s314_s11 = sadd.s32 4294967294, %s480_s9   ;;  %s480_s9 = sphi %s508_s9, %s679_s9   ;;  %s476_s8 = sphi %s506_s8, %s678_s8   ;;  %s472_s7 = sphi %s504_s7, %s677_s7   ;;  %s468_s6 = sphi %s502_s6, %s676_s6  }
   0x6   : > { %s527_s12 = sadd.s32 1, %s480_s9   ;;  %s24_s13 = sadd.s32 1, %s476_s8 }
   0x7   : > { %s21_s14 = ssub.s32 %s480_s9, %s527_s12  ;;  %p31_p0 = scmp.ne.s32.totalorder %s476_s8, %s472_s7 }
   0x8   : > { %p22_p1 = scmp.eq.s32.totalorder %s21_s14, 0  ;;  %p32_p2 = scmp.eq.s32.totalorder %s480_s9, 0 }
   0x9   : > { %p37_p3 = scmp.ne.s32.totalorder %s472_s7, %s468_s6  ;;  %p38_p4 = scmp.eq.s32.totalorder %s523_s10, 0 }
   0xa   : > { %s539_s15 = scalar_select %p22_p1, %s476_s8, %s24_s13  }
   0xb   : > { %p541_p5 = por %p32_p2, %p31_p0  ;;  %p545_p6 = por %p38_p4, %p37_p3 }
   0xc   : > { %p61_p7 = scmp.eq.s32.totalorder %s523_s10, 7  ;;  %p67_p8 = scmp.eq.s32.totalorder %s314_s11, 7 }
   0xd   : > { %p342_p9 = scmp.lt.s32.totalorder %s480_s9, 8  ;;  %s87_s20 = sand.u32 1, %s476_s8  }
   0xe   : > { %p551_p10 = por %p61_p7, %p31_p0  ;;  %p555_p11 = por %p67_p8, %p37_p3 }
   0xf   : > { %s328_s21 = sshll.u32 %s480_s9, 8  ;;  %s317_s22 = sshll.u32 %s87_s20, 4 }
  0x10   : > { %s671_s18 = scalar_select %p551_p10, 1, 0 }
  0x11   : > { %s672_s19 = scalar_select %p555_p11, 1, 0 }
  0x12   : > { %s564_s25 = scalar_lea.hbm %s666_s0, %s328_s21  ;;  %s91_s26 = scalar_lea.vmem [#allocation2], %s317_s22 }
  0x13   : > { %s98_s27 = sshll.u32 %s91_s26, 4  ;;  %p568_p12 = pnand %p342_p9, %p541_p5  ;;  %s572_s27 = int_to_ptr.vmem [resolvable:$true] %s98_s27 }
  0x14   : > { %s574_s29 = scalar_lea.sflag [#allocation3], %s87_s20  ;;  %s384_s30 = scalar_lea.hbm %s564_s25, 256 }
  0x15   : > { %p385_p13 = scmp.ne.s32.totalorder %s564_s25, %s384_s30  ;;  %p386_p0 = pneg %p568_p12 }
  0x16   : > { %s389_s4 = scalar_lea.hbm %s666_s0, 2048  ;;  %p390_p3 = scmp.lt.u32.totalorder %s564_s25, %s666_s0 }
  0x17   : > { %p387_p1 = pnand %p386_p0, %p385_p13  ;;  %p391_p4 = scmp.lt.u32.totalorder %s389_s4, %s384_s30 }
  0x18   : > { %p393_p7 = scmp.lt.u32.totalorder %s384_s30, %s564_s25 }
  0x19   : > { %p388_p2 = pneg %p387_p1  ;;  %p392_p5 = por %p391_p4, %p390_p3 }
  0x1b   : > { %p394_p8 = por %p393_p7, %p392_p5 }
  0x1d   : > { %p395_p9 = pnand %p394_p8, %p388_p2 }
  0x1f   : > { %398 = shalt.err (!%p395_p9)
}
  0x20   : > { %s399_s13 = scalar_lea.vmem %s572_s27, 256  ;;  %s482_s14 = smov [#allocation2]  }
  0x21   : > { %p400_p13 = scmp.ne.s32.totalorder %s572_s27, %s399_s13  ;;  %s404_s16 = sshll.u32 %s482_s14, 4  ;;  %s405_s16 = int_to_ptr.vmem [resolvable:$false] %s404_s16 }
  0x22   : > { %s406_s20 = scalar_lea.vmem %s405_s16, 512  ;;  %p407_p10 = scmp.lt.s32.totalorder %s572_s27, %s405_s16 }
  0x23   : > { %p402_p1 = pnand %p400_p13, %p386_p0  ;;  %p408_p3 = scmp.lt.s32.totalorder %s406_s20, %s399_s13 }
  0x25   : > { %p403_p11 = pneg %p402_p1  ;;  %p409_p4 = por %p408_p3, %p407_p10 }
  0x27   : > { %p410_p5 = pnand %p409_p4, %p403_p11 }
  0x29   : > { %413 = shalt.err (!%p410_p5)
}
  0x2a   : > { %s483_s21 = smov 128   ;;  %s484_s22 = smov 8  }
  0x2b   : > { %337 = dma.hbm_to_vmem [thread:$0]  (!%p568_p12), %s564_s25, 256, %s572_s27, %s574_s29, %s483_s21, %s483_s21, %s484_s22  }
  0x2c   : > { %p320_p0 = scmp.ge.s32.totalorder %s480_s9, 1  ;;  %p106_p2 = scmp.lt.s32.totalorder %s480_s9, 9 }
  0x2e   : > { %p107_p7 = pnand %p320_p0, %p106_p2 }
  0x2f   : > { %s605_s23 = sand.u32 (!%p107_p7), 1, %s472_s7  }
  0x30   : > { %110 = sbr.rel (%p107_p7) target bundleno = 331 (0x14b), region = 24  ;;  %s321_s24 = sshll.u32 (!%p107_p7), %s605_s23, 4 }
  0x31   : > { %s113_s26 = scalar_lea.sflag (!%p107_p7), [#allocation3], %s605_s23  ;;  %s116_s30 = scalar_lea.vmem (!%p107_p7), [#allocation2], %s321_s24 }
  0x37   : > { %459 = dma.done.wait (%p545_p6), %s113_s26, 256  }
  0x38   : > { %461 = vsyncadd (%p545_p6), %s113_s26, 4294967040  ;;  %v135_v0 = vld [vmem:[%s116_s30] sm:$0xff]  ;;  %v136_v1 = vld [vmem:[%s116_s30 + $0x8] sm:$0xff]  ;;  %vm141_vm0 = vcmask 1040384   ;;  %vm154_vm1 = vcmask 1046528   ;;  %vm164_vm2 = vcmask 1045504  }
  0x39   : > { %v138_v2 = vrot.slane %v135_v0, 1  ;;  %v142_v3 = vrot.slane %v135_v0, 7  ;;  %v143_v4 = vrot.slane %v136_v1, 7  ;;  %v148_v5 = vrot.slane %v136_v1, 5  ;;  %s485_s17 = smov 1   ;;  %s486_s25 = smov 127  }
  0x3a   : > { %s487_s27 = smov 3   ;;  %vm194_vm3 = vcmask 7168   ;;  %vm197_vm4 = vcmask 138240   ;;  %s488_s28 = smov 126   ;;  %v221_v39 = vmul.f32 -0.5625, %v136_v1  ;;  %v220_v41 = vmul.f32 -0.5625, %v135_v0 }
  0x3b   : > { %v144_v6 = vsel %vm141_vm0, %v142_v3, %v143_v4  ;;  %v150_v7 = vsel %vm141_vm0, %v138_v2, %v142_v3  ;;  %v151_v8 = vsel %vm141_vm0, %v143_v4, %v148_v5  ;;  %s329_s29 = sshll.u32 %s523_s10, 8  ;;  %s134_s2 = scalar_lea.vmem [#allocation5], %s321_s24  ;;  %vm224_vm5 = vcmask 130048  }
  0x3c   : > { %v155_v9 = vrot.slane %v150_v7, 1  ;;  %v156_v10 = vrot.slane %v144_v6, 1  ;;  %v165_v11 = vrot.slane %v150_v7, 2  ;;  %v166_v12 = vrot.slane %v144_v6, 2  ;;  %s241_s3 = sshll.u32 %s134_s2, 4  ;;  %s621_s11 = scalar_lea.hbm %s667_s1, %s329_s29  ;;  %s623_s3 = int_to_ptr.vmem [resolvable:$true] %s241_s3 }
  0x3d   : > { %v158_v13 = vrot.slane %v151_v8, 1  ;;  %v168_v14 = vrot.slane %v151_v8, 2  ;;  %s228_s10 = scalar_lea.sflag [#allocation4], %s605_s23  ;;  %s414_s13 = scalar_lea.vmem %s623_s3, 256 }
  0x3e   : > { %v157_v15 = vsel %vm154_vm1, %v155_v9, %v156_v10  ;;  %v167_v16 = vsel %vm164_vm2, %v165_v11, %v166_v12  ;;  %p415_p6 = scmp.ne.s32.totalorder %s623_s3, %s414_s13  ;;  %p674_p10 = scmp.ne.s32.totalorder %s671_s18, 0 }
  0x3f   : > { %v162_v17 = vadd.f32 %v157_v15, %v150_v7  ;;  %v159_v18 = vsel %vm154_vm1, %v156_v10, %v158_v13  ;;  %v169_v20 = vsel %vm164_vm2, %v166_v12, %v168_v14  ;;  %s489_s14 = smov [#allocation5]  }
  0x40   : > { %v163_v19 = vadd.f32 %v159_v18, %v144_v6  ;;  %p416_p11 = pnand %p415_p6, %p674_p10  ;;  %s418_s16 = sshll.u32 %s489_s14, 4  ;;  %s419_s16 = int_to_ptr.vmem [resolvable:$false] %s418_s16 }
  0x41   : > { %v172_v21 = vadd.f32 %v167_v16, %v162_v17  ;;  %s420_s20 = scalar_lea.vmem %s419_s16, 512  ;;  %p421_p8 = scmp.lt.s32.totalorder %s623_s3, %s419_s16 }
  0x42   : > { %v173_v22 = vadd.f32 %v169_v20, %v163_v19  ;;  %p417_p12 = pneg %p416_p11  ;;  %p422_p9 = scmp.lt.s32.totalorder %s420_s20, %s414_s13 }
  0x43   : > { %182 = vrot.lane.b32.xlu1 %v172_v21, %s485_s17  ;;  %176 = vrot.lane.b32.xlu0 %v172_v21, %s486_s25 }
  0x44   : > { %p423_p13 = por %p422_p9, %p421_p8 }
  0x46   : > { %p424_p1 = pnand %p423_p13, %p417_p12 }
  0x47   : > { %184 = vrot.lane.b32.xlu1 %v173_v22, %s485_s17  ;;  %178 = vrot.lane.b32.xlu0 %v173_v22, %s486_s25 }
  0x4b   : > { %190 = vrot.lane.b32.xlu1 %v173_v22, %s487_s27  ;;  %188 = vrot.lane.b32.xlu0 %v172_v21, %s487_s27 }
  0xb5   : > { %v183_v23 = vpop.permute.xlu1 %182  ;;  %v177_v24 = vpop.permute.xlu0 %176 }
  0xb6   : > { %v195_v27 = vsel %vm194_vm3, %v177_v24, %v183_v23 }
  0xb9   : > { %v185_v25 = vpop.permute.xlu1 %184  ;;  %v179_v26 = vpop.permute.xlu0 %178 }
  0xba   : > { %v196_v28 = vsel %vm194_vm3, %v179_v26, %v185_v25 }
  0xbd   : > { %v191_v29 = vpop.permute.xlu1 %190  ;;  %v189_v30 = vpop.permute.xlu0 %188 }
  0xbe   : > { %v199_v31 = vsel %vm197_vm4, %v196_v28, %v191_v29  ;;  %v198_v32 = vsel %vm197_vm4, %v195_v27, %v189_v30 }
  0xbf   : > { %204 = vrot.lane.b32.xlu1 %v199_v31, %s486_s25  ;;  %202 = vrot.lane.b32.xlu0 %v198_v32, %s486_s25 }
  0xc3   : > { %212 = vrot.lane.b32.xlu1 %v199_v31, %s488_s28  ;;  %210 = vrot.lane.b32.xlu0 %v198_v32, %s488_s28 }
 0x131   : > { %v205_v33 = vpop.permute.xlu1 %204  ;;  %v203_v34 = vpop.permute.xlu0 %202 }
 0x132   : > { %v209_v35 = vadd.f32 %v205_v33, %v199_v31  ;;  %v208_v36 = vadd.f32 %v203_v34, %v198_v32 }
 0x135   : > { %v213_v37 = vpop.permute.xlu1 %212  ;;  %v211_v38 = vpop.permute.xlu0 %210 }
 0x136   : > { %v217_v40 = vadd.f32 %v213_v37, %v209_v35  ;;  %v216_v42 = vadd.f32 %v211_v38, %v208_v36 }
 0x138   : > { %v219_v43 = vmul.f32 0.0625, %v217_v40  ;;  %v218_v44 = vmul.f32 0.0625, %v216_v42 }
 0x13a   : > { %v223_v45 = vadd.f32 %v221_v39, %v219_v43  ;;  %v222_v46 = vadd.f32 %v220_v41, %v218_v44 }
 0x13c   : > { %226 = vst.msk [vmem:[%s134_s2 + $0x8] sm:$0xff] %vm224_vm5, %v223_v45  ;;  %225 = vst.msk [vmem:[%s134_s2] sm:$0xff] %vm224_vm5, %v222_v46 }
 0x13d   : > { %427 = shalt.err (!%p424_p1)
}
 0x13e   : > { %s428_s21 = scalar_lea.hbm %s621_s11, 256  ;;  %s432_s26 = scalar_lea.hbm %s667_s1, 2048 }
 0x13f   : > { %p429_p3 = scmp.ne.s32.totalorder %s621_s11, %s428_s21  ;;  %p433_p0 = scmp.lt.u32.totalorder %s621_s11, %s667_s1 }
 0x140   : > { %p434_p2 = scmp.lt.u32.totalorder %s432_s26, %s428_s21  ;;  %p436_p6 = scmp.lt.u32.totalorder %s428_s21, %s621_s11 }
 0x141   : > { %p430_p4 = pnand %p429_p3, %p674_p10 }
 0x142   : > { %p435_p7 = por %p434_p2, %p433_p0 }
 0x143   : > { %p431_p5 = pneg %p430_p4 }
 0x144   : > { %p437_p11 = por %p436_p6, %p435_p7 }
 0x146   : > { %p438_p12 = pnand %p437_p11, %p431_p5 }
 0x148   : > { %441 = shalt.err (!%p438_p12)
}
 0x149   : > { %s490_s25 = smov 128   ;;  %s491_s27 = smov 8  }
 0x14a   : > { %332 = dma.vmem_to_hbm [thread:$0]  (%p674_p10), %s623_s3, 256, %s621_s11, %s228_s10, %s490_s25, %s490_s25, %s491_s27  }
 0x14b PF: > { %p343_p8 = scmp.ge.s32.totalorder %s480_s9, 2  ;;  %s256_s28 = sand.u32 1, %s468_s6  }
 0x14c   : > { %p675_p9 = scmp.ne.s32.totalorder %s672_s19, 0  ;;  %s257_s29 = scalar_lea.sflag [#allocation4], %s256_s28 }
 0x14e   : > { %p339_p13 = pnand %p343_p8, %p675_p9 }
 0x150   : > { %463 = dma.done.wait (!%p339_p13), %s257_s29, 256  }
 0x151   : > { %465 = vsyncadd (!%p339_p13), %s257_s29, 4294967040  ;;  %p14_p1 = scmp.ge.s32.totalorder %s527_s12, 10   ;;  %s676_s6 = smov %s472_s7 }
 0x152   : > { %s677_s7 = smov %s476_s8  ;;  %s678_s8 = smov %s539_s15 }
 0x153   : > { %s679_s9 = smov %s527_s12  ;;  %16 = sbr.rel (!%p14_p1) target bundleno = 5 (0x5), region = 69 }
 0x15a   :  { %262 = vsyncpa [#allocation3], 1 }
 0x15b   :  { %264 = vsyncpa [#allocation3 + $0x1], 1 }
 0x15c   :  { %265 = vsyncpa [#allocation4], 1 }
 0x15d   :  { %267 = vsyncpa [#allocation4 + $0x1], 1 }

</bundles_post_ra>
